<compile_context>
chip_gen: v6e
topology: v6e:2x2x1
jax: 0.10.0
libtpu: 0.0.40
codegen_flags: <defaults>
</compile_context>

<pallas_src>
import math

import jax
import jax.numpy as jnp
import numpy as np
from jax.experimental import pallas as pl
from jax.experimental.pallas import tpu as pltpu


def _round_up(n, m):
    return ((n + m - 1) // m) * m


def _pad2(a, rows, cols):
    return jnp.pad(a, ((0, rows - a.shape[0]), (0, cols - a.shape[1])))


def _mxu_rows():
    """Native MXU row width: 128 on v5e and older, 256 on v6e/v7x."""
    try:
        kind = jax.devices()[0].device_kind.lower()
    except Exception:
        return 128
    if any(v in kind for v in ("v2", "v3", "v4", "v5")):
        return 128
    return 256


def _vmem_limit_bytes(resident_bytes):
    # 2x headroom for f32 intermediates / compiler scratch; >= 8 MiB so small
    # configs never regress below the default; <= 64 MiB (v7x per-TC VMEM).
    return int(min(max(2 * resident_bytes + (2 << 20), 8 << 20), 64 << 20))


def _const_spec(shape, single_buffer):
    """BlockSpec for a grid-invariant (VMEM-resident) operand."""
    idx = lambda *args: (0,) * len(shape)
    if single_buffer:
        # Constant index_map -> block fetched once; Buffered(1) avoids
        # allocating a useless second buffer (halves resident weight VMEM).
        return pl.BlockSpec(shape, idx, pipeline_mode=pl.Buffered(1))
    return pl.BlockSpec(shape, idx)


# ---------------------------------------------------------------------------
# Kernels
# ---------------------------------------------------------------------------
def gru_cell_kernel(x_ref, h_ref, wx_ref, whrz_ref, whh_ref, b3_ref, o_ref):
    """One cell step on a (tb, *) batch tile.  x arrives pre-cast to bf16."""
    h = h_ref[...]                       # (tb, Hp)  f32 (needed f32 for blend)
    Hp = h_ref.shape[1]

    # Fused x-projection: x @ [Wxr | Wxz | Wxh] + folded biases
    xp = jnp.dot(x_ref[...], wx_ref[...],
                 preferred_element_type=jnp.float32) + b3_ref[...]
    # Fused h-projection for the r/z gates: h @ [Whr | Whz]
    hp = jnp.dot(h.astype(jnp.bfloat16), whrz_ref[...],
                 preferred_element_type=jnp.float32)

    r = jax.nn.sigmoid(xp[:, 0 * Hp:1 * Hp] + hp[:, 0 * Hp:1 * Hp])
    z = jax.nn.sigmoid(xp[:, 1 * Hp:2 * Hp] + hp[:, 1 * Hp:2 * Hp])

    rh = (r * h).astype(jnp.bfloat16)    # elementwise_prod node
    h_tilde = jnp.tanh(
        xp[:, 2 * Hp:3 * Hp]
        + jnp.dot(rh, whh_ref[...], preferred_element_type=jnp.float32))

    # blend(z, h, h_tilde) = z*h + (1-z)*h_tilde == h_tilde + z*(h - h_tilde)
    o_ref[...] = (h_tilde + z * (h - h_tilde)).astype(o_ref.dtype)


def gru_seq_kernel(x_ref, h0_ref, wx_ref, whrz_ref, whh_ref, b3_ref,
                   hseq_ref, h_carry):
    """Whole-sequence recurrence: grid=(T,), h carried in VMEM scratch."""
    Hp = h0_ref.shape[1]

    @pl.when(pl.program_id(0) == 0)
    def _():
        h_carry[...] = h0_ref[...]

    h = h_carry[...]                     # (Bp, Hp) f32

    xp = jnp.dot(x_ref[...], wx_ref[...],
                 preferred_element_type=jnp.float32) + b3_ref[...]
    hp = jnp.dot(h.astype(jnp.bfloat16), whrz_ref[...],
                 preferred_element_type=jnp.float32)

    r = jax.nn.sigmoid(xp[:, 0 * Hp:1 * Hp] + hp[:, 0 * Hp:1 * Hp])
    z = jax.nn.sigmoid(xp[:, 1 * Hp:2 * Hp] + hp[:, 1 * Hp:2 * Hp])

    rh = (r * h).astype(jnp.bfloat16)
    h_tilde = jnp.tanh(
        xp[:, 2 * Hp:3 * Hp]
        + jnp.dot(rh, whh_ref[...], preferred_element_type=jnp.float32))

    h_new = h_tilde + z * (h - h_tilde)
    h_carry[...] = h_new
    hseq_ref[...] = h_new.astype(hseq_ref.dtype)


# ---------------------------------------------------------------------------
# Host-side param prep (weight fusion, bias folding, padding, bf16 cast).
# Done once, outside the kernels.
# NOTE: bf16 recurrent weights compound error over long sequences; keep whrz /
# whh in f32 here if end-of-sequence accuracy matters more than throughput.
# ---------------------------------------------------------------------------
def prepare_gru_params(p, input_size, hidden_size):
    Ip = _round_up(input_size, 128)
    Hp = _round_up(hidden_size, 128)

    wx = jnp.concatenate(
        [_pad2(p["wxr"], Ip, Hp), _pad2(p["wxz"], Ip, Hp), _pad2(p["wxh"], Ip, Hp)],
        axis=1).astype(jnp.bfloat16)                       # (Ip, 3*Hp)
    whrz = jnp.concatenate(
        [_pad2(p["whr"], Hp, Hp), _pad2(p["whz"], Hp, Hp)],
        axis=1).astype(jnp.bfloat16)                       # (Hp, 2*Hp)
    whh = _pad2(p["whh"], Hp, Hp).astype(jnp.bfloat16)     # (Hp, Hp)
    b3 = jnp.concatenate(
        [_pad2(p["bxr"] + p["bhr"], 1, Hp),
         _pad2(p["bxz"] + p["bhz"], 1, Hp),
         _pad2(p["bxh"] + p["bhh"], 1, Hp)],
        axis=1).astype(jnp.float32)                        # (1, 3*Hp)
    return dict(wx=wx, whrz=whrz, whh=whh, b3=b3, Ip=Ip, Hp=Hp)


# ---------------------------------------------------------------------------
# Wrapper: one cell step.  Returns (h_new_0,), matching CustomRNNCell.forward.
# For multi-step workloads prefer custom_rnn_sequence below (weights DMA'd
# once, hidden state never leaves VMEM between steps).
# ---------------------------------------------------------------------------
def custom_rnn_cell(x, hidden_tuple, fused):
    (h0,) = hidden_tuple
    batch, _ = x.shape
    hidden_size = h0.shape[1]
    Ip, Hp = fused["Ip"], fused["Hp"]

    # Batch tile matched to MXU row width; v5e drops to 64 for very large Hp
    # to cap the live (tb, 3Hp)/(tb, 2Hp) f32 intermediates.
    tb_max = _mxu_rows()
    if tb_max == 128 and Hp >= 2048:
        tb_max = 64
    Bp0 = _round_up(batch, 8)
    if Bp0 <= tb_max:
        tb, Bp = Bp0, Bp0
    else:
        tb, Bp = tb_max, _round_up(batch, tb_max)

    x_p = _pad2(x, Bp, Ip).astype(jnp.bfloat16)           # bf16 matmul operand
    h_p = _pad2(h0.astype(jnp.float32), Bp, Hp)

    wx, whrz, whh, b3 = fused["wx"], fused["whrz"], fused["whh"], fused["b3"]

    weight_bytes = 2 * (wx.size + whrz.size + whh.size) + 4 * b3.size
    resident = (weight_bytes
                + 2 * (2 * tb * Ip)                # x tile, double-buffered
                + 2 * 4 * (2 * tb * Hp)            # h + o tiles, double-buffered
                + 4 * tb * (3 * Hp + 2 * Hp))      # xp / hp f32 intermediates

    flops = 2 * Bp * (Ip * 3 * Hp + Hp * 2 * Hp + Hp * Hp)
    bytes_accessed = weight_bytes + 2 * x_p.size + 4 * h_p.size + 4 * Bp * Hp

    def run(single_buffer):
        return pl.pallas_call(
            gru_cell_kernel,
            out_shape=jax.ShapeDtypeStruct((Bp, Hp), jnp.float32),
            grid_spec=pltpu.PrefetchScalarGridSpec(
                num_scalar_prefetch=0,
                grid=(Bp // tb,),
                in_specs=[
                    pl.BlockSpec((tb, Ip), lambda i: (i, 0)),      # x tile
                    pl.BlockSpec((tb, Hp), lambda i: (i, 0)),      # h tile
                    _const_spec((Ip, 3 * Hp), single_buffer),      # fused Wx
                    _const_spec((Hp, 2 * Hp), single_buffer),      # fused Wh_rz
                    _const_spec((Hp, Hp), single_buffer),          # Whh
                    _const_spec((1, 3 * Hp), single_buffer),       # folded biases
                ],
                out_specs=pl.BlockSpec((tb, Hp), lambda i: (i, 0)),
            ),
            compiler_params=pltpu.CompilerParams(
                dimension_semantics=("parallel",),
                vmem_limit_bytes=_vmem_limit_bytes(resident),
            ),
            cost_estimate=pl.CostEstimate(
                flops=flops,
                transcendentals=3 * Bp * Hp,
                bytes_accessed=bytes_accessed,
            ),
        )(x_p, h_p, wx, whrz, whh, b3)

    try:
        out = run(True)
    except Exception:   # pl.Buffered(1) unsupported on this build -> default buffering
        out = run(False)

    return (out[:batch, :hidden_size],)


# ---------------------------------------------------------------------------
# Sequence-fused wrapper: runs the cell over xs[t] for t in [0, T) inside a
# single pallas_call.  Weights live in VMEM for the whole sequence; the hidden
# state is carried in a VMEM scratch; x is pipelined over the time axis.
# Returns (h_seq[(T, B, H)], (h_T,)).
# ---------------------------------------------------------------------------
def custom_rnn_sequence(xs, hidden_tuple, fused):
    (h0,) = hidden_tuple
    T, batch, input_size = xs.shape
    hidden_size = h0.shape[1]
    Ip, Hp = fused["Ip"], fused["Hp"]
    Bp = _round_up(batch, 8)

    xs_p = jnp.pad(xs, ((0, 0), (0, Bp - batch), (0, Ip - input_size))
                   ).astype(jnp.bfloat16)
    h0_p = _pad2(h0.astype(jnp.float32), Bp, Hp)

    wx, whrz, whh, b3 = fused["wx"], fused["whrz"], fused["whh"], fused["b3"]

    weight_bytes = 2 * (wx.size + whrz.size + whh.size) + 4 * b3.size
    resident = (weight_bytes
                + 4 * Bp * Hp                       # h0 block + h_carry scratch
                + 2 * (2 * Bp * Ip)                 # x_t, double-buffered
                + 2 * 4 * Bp * Hp                   # hseq out, double-buffered
                + 4 * Bp * (3 * Hp + 2 * Hp))       # xp / hp f32 intermediates

    flops = 2 * T * Bp * (Ip * 3 * Hp + Hp * 2 * Hp + Hp * Hp)
    bytes_accessed = (weight_bytes + 2 * xs_p.size + 4 * h0_p.size
                      + 4 * T * Bp * Hp)

    def run(single_buffer):
        return pl.pallas_call(
            gru_seq_kernel,
            out_shape=jax.ShapeDtypeStruct((T, Bp, Hp), jnp.float32),
            grid_spec=pltpu.PrefetchScalarGridSpec(
                num_scalar_prefetch=0,
                grid=(T,),
                in_specs=[
                    pl.BlockSpec((None, Bp, Ip), lambda t: (t, 0, 0)),  # x_t (pipelined)
                    _const_spec((Bp, Hp), single_buffer),               # h0 (read at t=0)
                    _const_spec((Ip, 3 * Hp), single_buffer),           # fused Wx
                    _const_spec((Hp, 2 * Hp), single_buffer),           # fused Wh_rz
                    _const_spec((Hp, Hp), single_buffer),               # Whh
                    _const_spec((1, 3 * Hp), single_buffer),            # folded biases
                ],
                out_specs=pl.BlockSpec((None, Bp, Hp), lambda t: (t, 0, 0)),
                scratch_shapes=[pltpu.VMEM((Bp, Hp), jnp.float32)],     # h carry
            ),
            compiler_params=pltpu.CompilerParams(
                dimension_semantics=("arbitrary",),   # serial recurrence over time
                vmem_limit_bytes=_vmem_limit_bytes(resident),
            ),
            cost_estimate=pl.CostEstimate(
                flops=flops,
                transcendentals=3 * T * Bp * Hp,
                bytes_accessed=bytes_accessed,
            ),
        )(xs_p, h0_p, wx, whrz, whh, b3)

    try:
        hseq = run(True)
    except Exception:   # pl.Buffered(1) unsupported on this build -> default buffering
        hseq = run(False)

    h_seq = hseq[:, :batch, :hidden_size]
    return h_seq, (h_seq[-1],)


# ---------------------------------------------------------------------------
# Init + pure-JAX reference (f32, unfused) for the correctness check.
# ---------------------------------------------------------------------------
def init_params(key, input_size, hidden_size):
    """PyTorch nn.Linear-style init: U(-k, k), k = 1/sqrt(fan_in)."""
    keys = jax.random.split(key, 12)

    def lin(kw, kb, fan_in, fan_out):
        k = 1.0 / math.sqrt(fan_in)
        w = jax.random.uniform(kw, (fan_in, fan_out), jnp.float32, -k, k)
        b = jax.random.uniform(kb, (1, fan_out), jnp.float32, -k, k)
        return w, b

    wxr, bxr = lin(keys[0], keys[1], input_size, hidden_size)
    whr, bhr = lin(keys[2], keys[3], hidden_size, hidden_size)
    wxz, bxz = lin(keys[4], keys[5], input_size, hidden_size)
    whz, bhz = lin(keys[6], keys[7], hidden_size, hidden_size)
    wxh, bxh = lin(keys[8], keys[9], input_size, hidden_size)
    whh, bhh = lin(keys[10], keys[11], hidden_size, hidden_size)
    return dict(wxr=wxr, bxr=bxr, whr=whr, bhr=bhr,
                wxz=wxz, bxz=bxz, whz=whz, bhz=bhz,
                wxh=wxh, bxh=bxh, whh=whh, bhh=bhh)


def custom_rnn_cell_ref(x, hidden_tuple, p):
    (h,) = hidden_tuple
    r = jax.nn.sigmoid(x @ p["wxr"] + p["bxr"] + h @ p["whr"] + p["bhr"])
    z = jax.nn.sigmoid(x @ p["wxz"] + p["bxz"] + h @ p["whz"] + p["bhz"])
    h_tilde = jnp.tanh(x @ p["wxh"] + p["bxh"] + (r * h) @ p["whh"] + p["bhh"])
    return (z * h + (1.0 - z) * h_tilde,)


if __name__ == "__main__":
    batch = 8
    input_size = 16
    hidden_size = 32
    seq_len = 8

    key = jax.random.PRNGKey(0)
    k_param, k_x, k_h, k_xs = jax.random.split(key, 4)

    params = init_params(k_param, input_size, hidden_size)
    fused = prepare_gru_params(params, input_size, hidden_size)

    # ---- single cell step (matches CustomRNNCell.forward semantics) ----
    x = jax.random.normal(k_x, (batch, input_size), dtype=jnp.float32)
    h0 = jax.random.normal(k_h, (batch, hidden_size), dtype=jnp.float32)

    (h_new,) = custom_rnn_cell(x, (h0,), fused)
    h_new = jax.block_until_ready(h_new)

    (h_ref,) = custom_rnn_cell_ref(x, (h0,), params)
    # bf16 matmul operands (f32 accumulation) -> looser tolerance than pure f32.
    np.testing.assert_allclose(np.asarray(h_new), np.asarray(h_ref),
                               rtol=2e-2, atol=2e-2)

    # ---- sequence-fused path (weights DMA'd once, h carried in VMEM) ----
    xs = jax.random.normal(k_xs, (seq_len, batch, input_size), dtype=jnp.float32)
    h_seq, (h_last,) = custom_rnn_sequence(xs, (h0,), fused)
    h_last = jax.block_until_ready(h_last)

    # Reference loop with identically bf16-quantized weights (isolates kernel
    # structure from the deliberate bf16 weight quantization over T steps).
    p_q = {k: (v.astype(jnp.bfloat16).astype(jnp.float32) if k.startswith("w") else v)
           for k, v in params.items()}
    h_ref_t = h0
    hs_ref = []
    for t in range(seq_len):
        (h_ref_t,) = custom_rnn_cell_ref(xs[t], (h_ref_t,), p_q)
        hs_ref.append(h_ref_t)
    hs_ref = jnp.stack(hs_ref)
    np.testing.assert_allclose(np.asarray(h_seq), np.asarray(hs_ref),
                               rtol=2e-2, atol=2e-2)

    print("KERNEL_OK")
</pallas_src>

<mosaic_0001>
module attributes {stable_mosaic.version = 11 : i64} {
  func.func @gru_cell_kernel(%arg0: i32, %arg1: memref<8x128xbf16, #tpu.memory_space<vmem>>, %arg2: memref<8x128xf32, #tpu.memory_space<vmem>>, %arg3: memref<128x384xbf16, #tpu.memory_space<vmem>>, %arg4: memref<128x256xbf16, #tpu.memory_space<vmem>>, %arg5: memref<128x128xbf16, #tpu.memory_space<vmem>>, %arg6: memref<1x384xf32, #tpu.memory_space<vmem>>, %arg7: memref<8x128xf32, #tpu.memory_space<vmem>>) attributes {dimension_semantics = [#tpu.dimension_semantics<parallel>], iteration_bounds = array<i64: 1>, scalar_prefetch = 0 : i64, scratch_operands = 0 : i64, tpu.core_type = #tpu.core_type<tc>, window_params = [{transform_indices = @transform_0, window_bounds = array<i64: 8, 128>}, {transform_indices = @transform_1, window_bounds = array<i64: 8, 128>}, {pipeline_mode = #tpu.pipeline_mode<synchronous>, transform_indices = @transform_2, window_bounds = array<i64: 128, 384>}, {pipeline_mode = #tpu.pipeline_mode<synchronous>, transform_indices = @transform_3, window_bounds = array<i64: 128, 256>}, {pipeline_mode = #tpu.pipeline_mode<synchronous>, transform_indices = @transform_4, window_bounds = array<i64: 128, 128>}, {pipeline_mode = #tpu.pipeline_mode<synchronous>, transform_indices = @transform_5, window_bounds = array<i64: 1, 384>}, {transform_indices = @transform_6, window_bounds = array<i64: 8, 128>}]} {
    %c0 = arith.constant 0 : index
    %c0_0 = arith.constant 0 : index
    %0 = vector.load %arg2[%c0, %c0_0] : memref<8x128xf32, #tpu.memory_space<vmem>>, vector<8x128xf32>
    %c0_1 = arith.constant 0 : index
    %c0_2 = arith.constant 0 : index
    %1 = vector.load %arg1[%c0_1, %c0_2] : memref<8x128xbf16, #tpu.memory_space<vmem>>, vector<8x128xbf16>
    %c0_3 = arith.constant 0 : index
    %c0_4 = arith.constant 0 : index
    %2 = vector.load %arg3[%c0_3, %c0_4] : memref<128x384xbf16, #tpu.memory_space<vmem>>, vector<128x384xbf16>
    %cst = arith.constant dense<0.000000e+00> : vector<8x384xf32>
    %3 = tpu.matmul %1, %2, %cst {dimension_numbers = #tpu.dot_dimension_numbers<[1], [0], [0], [1], [0, 0, 1, 1], [], []>} : vector<8x128xbf16>, vector<128x384xbf16>, vector<8x384xf32> -> vector<8x384xf32>
    %c0_5 = arith.constant 0 : index
    %c0_6 = arith.constant 0 : index
    %4 = vector.load %arg6[%c0_5, %c0_6] : memref<1x384xf32, #tpu.memory_space<vmem>>, vector<1x384xf32>
    %5 = vector.broadcast %4 : vector<1x384xf32> to vector<8x384xf32>
    %6 = arith.addf %3, %5 : vector<8x384xf32>
    %7 = arith.truncf %0 : vector<8x128xf32> to vector<8x128xbf16>
    %c0_7 = arith.constant 0 : index
    %c0_8 = arith.constant 0 : index
    %8 = vector.load %arg4[%c0_7, %c0_8] : memref<128x256xbf16, #tpu.memory_space<vmem>>, vector<128x256xbf16>
    %cst_9 = arith.constant dense<0.000000e+00> : vector<8x256xf32>
    %9 = tpu.matmul %7, %8, %cst_9 {dimension_numbers = #tpu.dot_dimension_numbers<[1], [0], [0], [1], [0, 0, 1, 1], [], []>} : vector<8x128xbf16>, vector<128x256xbf16>, vector<8x256xf32> -> vector<8x256xf32>
    %10 = vector.extract_strided_slice %6 {offsets = [0, 0], sizes = [8, 128], strides = [1, 1]} : vector<8x384xf32> to vector<8x128xf32>
    %11 = vector.extract_strided_slice %9 {offsets = [0, 0], sizes = [8, 128], strides = [1, 1]} : vector<8x256xf32> to vector<8x128xf32>
    %12 = arith.addf %10, %11 : vector<8x128xf32>
    %13 = arith.negf %12 : vector<8x128xf32>
    %14 = math.exp %13 : vector<8x128xf32>
    %cst_10 = arith.constant 1.000000e+00 : f32
    %15 = vector.broadcast %cst_10 : f32 to vector<8x128xf32>
    %16 = arith.addf %15, %14 : vector<8x128xf32>
    %17 = arith.divf %15, %16 : vector<8x128xf32>
    %18 = vector.extract_strided_slice %6 {offsets = [0, 128], sizes = [8, 128], strides = [1, 1]} : vector<8x384xf32> to vector<8x128xf32>
    %19 = vector.extract_strided_slice %9 {offsets = [0, 128], sizes = [8, 128], strides = [1, 1]} : vector<8x256xf32> to vector<8x128xf32>
    %20 = arith.addf %18, %19 : vector<8x128xf32>
    %21 = arith.negf %20 : vector<8x128xf32>
    %22 = math.exp %21 : vector<8x128xf32>
    %cst_11 = arith.constant 1.000000e+00 : f32
    %23 = vector.broadcast %cst_11 : f32 to vector<8x128xf32>
    %24 = arith.addf %23, %22 : vector<8x128xf32>
    %25 = arith.divf %23, %24 : vector<8x128xf32>
    %26 = arith.mulf %17, %0 : vector<8x128xf32>
    %27 = arith.truncf %26 : vector<8x128xf32> to vector<8x128xbf16>
    %28 = vector.extract_strided_slice %6 {offsets = [0, 256], sizes = [8, 128], strides = [1, 1]} : vector<8x384xf32> to vector<8x128xf32>
    %c0_12 = arith.constant 0 : index
    %c0_13 = arith.constant 0 : index
    %29 = vector.load %arg5[%c0_12, %c0_13] : memref<128x128xbf16, #tpu.memory_space<vmem>>, vector<128x128xbf16>
    %cst_14 = arith.constant dense<0.000000e+00> : vector<8x128xf32>
    %30 = tpu.matmul %27, %29, %cst_14 {dimension_numbers = #tpu.dot_dimension_numbers<[1], [0], [0], [1], [0, 0, 1, 1], [], []>} : vector<8x128xbf16>, vector<128x128xbf16>, vector<8x128xf32> -> vector<8x128xf32>
    %31 = arith.addf %28, %30 : vector<8x128xf32>
    %32 = math.tanh %31 : vector<8x128xf32>
    %33 = arith.subf %0, %32 : vector<8x128xf32>
    %34 = arith.mulf %25, %33 : vector<8x128xf32>
    %35 = arith.addf %32, %34 : vector<8x128xf32>
    %c0_15 = arith.constant 0 : index
    %c0_16 = arith.constant 0 : index
    %36 = vector.load %arg7[%c0_15, %c0_16] : memref<8x128xf32, #tpu.memory_space<vmem>>, vector<8x128xf32>
    tpu.vector_store %arg7[%c0_15, %c0_16], %35 {strides = array<i32>} : memref<8x128xf32, #tpu.memory_space<vmem>>, vector<8x128xf32>,
    return
  }
  func.func @transform_0(%arg0: i32) -> (i32, i32) {
    %c0_i32 = arith.constant 0 : i32
    %c0_i32_0 = arith.constant 0 : i32
    return %arg0, %c0_i32 : i32, i32
  }
  func.func @transform_1(%arg0: i32) -> (i32, i32) {
    %c0_i32 = arith.constant 0 : i32
    %c0_i32_0 = arith.constant 0 : i32
    return %arg0, %c0_i32 : i32, i32
  }
  func.func @transform_2(%arg0: i32) -> (i32, i32) {
    %c0_i32 = arith.constant 0 : i32
    %c0_i32_0 = arith.constant 0 : i32
    %c0_i32_1 = arith.constant 0 : i32
    return %c0_i32, %c0_i32_0 : i32, i32
  }
  func.func @transform_3(%arg0: i32) -> (i32, i32) {
    %c0_i32 = arith.constant 0 : i32
    %c0_i32_0 = arith.constant 0 : i32
    %c0_i32_1 = arith.constant 0 : i32
    return %c0_i32, %c0_i32_0 : i32, i32
  }
  func.func @transform_4(%arg0: i32) -> (i32, i32) {
    %c0_i32 = arith.constant 0 : i32
    %c0_i32_0 = arith.constant 0 : i32
    %c0_i32_1 = arith.constant 0 : i32
    return %c0_i32, %c0_i32_0 : i32, i32
  }
  func.func @transform_5(%arg0: i32) -> (i32, i32) {
    %c0_i32 = arith.constant 0 : i32
    %c0_i32_0 = arith.constant 0 : i32
    %c0_i32_1 = arith.constant 0 : i32
    return %c0_i32, %c0_i32_0 : i32, i32
  }
  func.func @transform_6(%arg0: i32) -> (i32, i32) {
    %c0_i32 = arith.constant 0 : i32
    %c0_i32_0 = arith.constant 0 : i32
    return %arg0, %c0_i32 : i32, i32
  }
}

module attributes {stable_mosaic.version = 11 : i64} {
  func.func @gru_cell_kernel(%arg0: i32, %arg1: memref<8x128xbf16, #tpu.memory_space<vmem>>, %arg2: memref<8x128xf32, #tpu.memory_space<vmem>>, %arg3: memref<128x384xbf16, #tpu.memory_space<vmem>>, %arg4: memref<128x256xbf16, #tpu.memory_space<vmem>>, %arg5: memref<128x128xbf16, #tpu.memory_space<vmem>>, %arg6: memref<1x384xf32, #tpu.memory_space<vmem>>, %arg7: memref<8x128xf32, #tpu.memory_space<vmem>>) attributes {dimension_semantics = [#tpu.dimension_semantics<parallel>], iteration_bounds = array<i64: 1>, scalar_prefetch = 0 : i64, scratch_operands = 0 : i64, tpu.core_type = #tpu.core_type<tc>, window_params = [{transform_indices = @transform_0, window_bounds = array<i64: 8, 128>}, {transform_indices = @transform_1, window_bounds = array<i64: 8, 128>}, {pipeline_mode = #tpu.pipeline_mode<synchronous>, transform_indices = @transform_2, window_bounds = array<i64: 128, 384>}, {pipeline_mode = #tpu.pipeline_mode<synchronous>, transform_indices = @transform_3, window_bounds = array<i64: 128, 256>}, {pipeline_mode = #tpu.pipeline_mode<synchronous>, transform_indices = @transform_4, window_bounds = array<i64: 128, 128>}, {pipeline_mode = #tpu.pipeline_mode<synchronous>, transform_indices = @transform_5, window_bounds = array<i64: 1, 384>}, {transform_indices = @transform_6, window_bounds = array<i64: 8, 128>}]} {
    %c0 = arith.constant 0 : index
    %c0_0 = arith.constant 0 : index
    %0 = vector.load %arg2[%c0, %c0_0] : memref<8x128xf32, #tpu.memory_space<vmem>>, vector<8x128xf32>
    %c0_1 = arith.constant 0 : index
    %c0_2 = arith.constant 0 : index
    %1 = vector.load %arg1[%c0_1, %c0_2] : memref<8x128xbf16, #tpu.memory_space<vmem>>, vector<8x128xbf16>
    %c0_3 = arith.constant 0 : index
    %c0_4 = arith.constant 0 : index
    %2 = vector.load %arg3[%c0_3, %c0_4] : memref<128x384xbf16, #tpu.memory_space<vmem>>, vector<128x384xbf16>
    %cst = arith.constant dense<0.000000e+00> : vector<8x384xf32>
    %3 = tpu.matmul %1, %2, %cst {dimension_numbers = #tpu.dot_dimension_numbers<[1], [0], [0], [1], [0, 0, 1, 1], [], []>} : vector<8x128xbf16>, vector<128x384xbf16>, vector<8x384xf32> -> vector<8x384xf32>
    %c0_5 = arith.constant 0 : index
    %c0_6 = arith.constant 0 : index
    %4 = vector.load %arg6[%c0_5, %c0_6] : memref<1x384xf32, #tpu.memory_space<vmem>>, vector<1x384xf32>
    %5 = vector.broadcast %4 : vector<1x384xf32> to vector<8x384xf32>
    %6 = arith.addf %3, %5 : vector<8x384xf32>
    %7 = arith.truncf %0 : vector<8x128xf32> to vector<8x128xbf16>
    %c0_7 = arith.constant 0 : index
    %c0_8 = arith.constant 0 : index
    %8 = vector.load %arg4[%c0_7, %c0_8] : memref<128x256xbf16, #tpu.memory_space<vmem>>, vector<128x256xbf16>
    %cst_9 = arith.constant dense<0.000000e+00> : vector<8x256xf32>
    %9 = tpu.matmul %7, %8, %cst_9 {dimension_numbers = #tpu.dot_dimension_numbers<[1], [0], [0], [1], [0, 0, 1, 1], [], []>} : vector<8x128xbf16>, vector<128x256xbf16>, vector<8x256xf32> -> vector<8x256xf32>
    %10 = vector.extract_strided_slice %6 {offsets = [0, 0], sizes = [8, 128], strides = [1, 1]} : vector<8x384xf32> to vector<8x128xf32>
    %11 = vector.extract_strided_slice %9 {offsets = [0, 0], sizes = [8, 128], strides = [1, 1]} : vector<8x256xf32> to vector<8x128xf32>
    %12 = arith.addf %10, %11 : vector<8x128xf32>
    %13 = arith.negf %12 : vector<8x128xf32>
    %14 = math.exp %13 : vector<8x128xf32>
    %cst_10 = arith.constant 1.000000e+00 : f32
    %15 = vector.broadcast %cst_10 : f32 to vector<8x128xf32>
    %16 = arith.addf %15, %14 : vector<8x128xf32>
    %17 = arith.divf %15, %16 : vector<8x128xf32>
    %18 = vector.extract_strided_slice %6 {offsets = [0, 128], sizes = [8, 128], strides = [1, 1]} : vector<8x384xf32> to vector<8x128xf32>
    %19 = vector.extract_strided_slice %9 {offsets = [0, 128], sizes = [8, 128], strides = [1, 1]} : vector<8x256xf32> to vector<8x128xf32>
    %20 = arith.addf %18, %19 : vector<8x128xf32>
    %21 = arith.negf %20 : vector<8x128xf32>
    %22 = math.exp %21 : vector<8x128xf32>
    %cst_11 = arith.constant 1.000000e+00 : f32
    %23 = vector.broadcast %cst_11 : f32 to vector<8x128xf32>
    %24 = arith.addf %23, %22 : vector<8x128xf32>
    %25 = arith.divf %23, %24 : vector<8x128xf32>
    %26 = arith.mulf %17, %0 : vector<8x128xf32>
    %27 = arith.truncf %26 : vector<8x128xf32> to vector<8x128xbf16>
    %28 = vector.extract_strided_slice %6 {offsets = [0, 256], sizes = [8, 128], strides = [1, 1]} : vector<8x384xf32> to vector<8x128xf32>
    %c0_12 = arith.constant 0 : index
    %c0_13 = arith.constant 0 : index
    %29 = vector.load %arg5[%c0_12, %c0_13] : memref<128x128xbf16, #tpu.memory_space<vmem>>, vector<128x128xbf16>
    %cst_14 = arith.constant dense<0.000000e+00> : vector<8x128xf32>
    %30 = tpu.matmul %27, %29, %cst_14 {dimension_numbers = #tpu.dot_dimension_numbers<[1], [0], [0], [1], [0, 0, 1, 1], [], []>} : vector<8x128xbf16>, vector<128x128xbf16>, vector<8x128xf32> -> vector<8x128xf32>
    %31 = arith.addf %28, %30 : vector<8x128xf32>
    %32 = math.tanh %31 : vector<8x128xf32>
    %33 = arith.subf %0, %32 : vector<8x128xf32>
    %34 = arith.mulf %25, %33 : vector<8x128xf32>
    %35 = arith.addf %32, %34 : vector<8x128xf32>
    %c0_15 = arith.constant 0 : index
    %c0_16 = arith.constant 0 : index
    %36 = vector.load %arg7[%c0_15, %c0_16] : memref<8x128xf32, #tpu.memory_space<vmem>>, vector<8x128xf32>
    tpu.vector_store %arg7[%c0_15, %c0_16], %35 {strides = array<i32>} : memref<8x128xf32, #tpu.memory_space<vmem>>, vector<8x128xf32>,
    return
  }
  func.func @transform_0(%arg0: i32) -> (i32, i32) {
    %c0_i32 = arith.constant 0 : i32
    %c0_i32_0 = arith.constant 0 : i32
    return %arg0, %c0_i32 : i32, i32
  }
  func.func @transform_1(%arg0: i32) -> (i32, i32) {
    %c0_i32 = arith.constant 0 : i32
    %c0_i32_0 = arith.constant 0 : i32
    return %arg0, %c0_i32 : i32, i32
  }
  func.func @transform_2(%arg0: i32) -> (i32, i32) {
    %c0_i32 = arith.constant 0 : i32
    %c0_i32_0 = arith.constant 0 : i32
    %c0_i32_1 = arith.constant 0 : i32
    return %c0_i32, %c0_i32_0 : i32, i32
  }
  func.func @transform_3(%arg0: i32) -> (i32, i32) {
    %c0_i32 = arith.constant 0 : i32
    %c0_i32_0 = arith.constant 0 : i32
    %c0_i32_1 = arith.constant 0 : i32
    return %c0_i32, %c0_i32_0 : i32, i32
  }
  func.func @transform_4(%arg0: i32) -> (i32, i32) {
    %c0_i32 = arith.constant 0 : i32
    %c0_i32_0 = arith.constant 0 : i32
    %c0_i32_1 = arith.constant 0 : i32
    return %c0_i32, %c0_i32_0 : i32, i32
  }
  func.func @transform_5(%arg0: i32) -> (i32, i32) {
    %c0_i32 = arith.constant 0 : i32
    %c0_i32_0 = arith.constant 0 : i32
    %c0_i32_1 = arith.constant 0 : i32
    return %c0_i32, %c0_i32_0 : i32, i32
  }
  func.func @transform_6(%arg0: i32) -> (i32, i32) {
    %c0_i32 = arith.constant 0 : i32
    %c0_i32_0 = arith.constant 0 : i32
    return %arg0, %c0_i32 : i32, i32
  }
}

</mosaic_0001>

<bundles_post_ra>
// kernel: tpu_custom_call.1
= control target key start
LH: loop header
LB: loop body
LE: loop exit
PB: predicated region body
PF: predicated region fallthrough
CT: control target
= control target key end

     0   :  { %11 = vsyncpa [#allocation3], 0  ;;  %s1036_s0 = inlined_call_operand.hbm [shape: bf16[8,128], index: 0, kind: input, shape index: {}]   ;;  %s1037_s1 = inlined_call_operand.hbm [shape: f32[8,128], index: 1, kind: input, shape index: {}]   ;;  %s1038_s2 = inlined_call_operand.hbm [shape: bf16[128,384], index: 2, kind: input, shape index: {}]   ;;  %s1039_s3 = inlined_call_operand.hbm [shape: bf16[128,256], index: 3, kind: input, shape index: {}]   ;;  %s1040_s4 = inlined_call_operand.hbm [shape: bf16[128,128], index: 4, kind: input, shape index: {}]   ;;  %s1041_s5 = inlined_call_operand.vmem [shape: f32[1,384], index: 5, kind: input, shape index: {}]   ;;  %s1042_s6 = inlined_call_operand.hbm [shape: f32[8,128], index: 6, kind: output, shape index: {}]  }
   0x1   :  { %12 = vsyncpa [#allocation6], 0 }
   0x2   :  { %13 = vsyncpa [#allocation9], 0 }
   0x3   :  { %14 = vsyncpa [#allocation4], 0  ;;  %s955_s21 = smov [#allocation5]   ;;  %s956_s23 = smov [#allocation8]  }
   0x4   :  { %s31_s22 = sshll.u32 %s955_s21, 4  ;;  %s52_s24 = sshll.u32 %s956_s23, 4  ;;  %s32_s22 = int_to_ptr.vmem [resolvable:$true] %s31_s22  ;;  %s53_s24 = int_to_ptr.vmem [resolvable:$true] %s52_s24 }
   0x5   :  { %s835_s25 = scalar_lea.vmem %s32_s22, 128  ;;  %p840_p1 = scmp.lt.s32.totalorder %s32_s22, %s32_s22 }
   0x6   :  { %p836_p0 = scmp.ne.s32.totalorder %s32_s22, %s835_s25  ;;  %p841_p2 = scmp.lt.s32.totalorder %s835_s25, %s835_s25 }
   0x8   :  { %p842_p3 = por %p841_p2, %p840_p1 }
   0xa   :  { %p843_p4 = pnand %p842_p3, %p836_p0 }
   0xc   :  { %846 = shalt.err (!%p843_p4)
}
   0xd   :  { %34 = dma.hbm_to_vmem [thread:$0]  %s1037_s1, 128, %s32_s22, [#allocation6]  }
   0xe   :  { %s855_s28 = scalar_lea.vmem %s53_s24, 2048  ;;  %p860_p6 = scmp.lt.s32.totalorder %s53_s24, %s53_s24 }
   0xf   :  { %p856_p5 = scmp.ne.s32.totalorder %s53_s24, %s855_s28  ;;  %p861_p7 = scmp.lt.s32.totalorder %s855_s28, %s855_s28 }
  0x11   :  { %p862_p8 = por %p861_p7, %p860_p6 }
  0x13   :  { %p863_p9 = pnand %p862_p8, %p856_p5 }
  0x15   :  { %866 = shalt.err (!%p863_p9)
}
  0x16   :  { %s957_s29 = smov 128   ;;  %s958_s30 = smov 8  }
  0x17   :  { %58 = dma.hbm_to_vmem [thread:$0]  %s1039_s3, 2048, %s53_s24, [#allocation9], %s957_s29, %s957_s29, %s958_s30  }
  0x18   :  { %s959_s9 = smov [#allocation2]   ;;  %s960_s11 = smov [#allocation7]  }
  0x19   :  { %s21_s10 = sshll.u32 %s959_s9, 4  ;;  %s40_s12 = sshll.u32 %s960_s11, 4  ;;  %s22_s10 = int_to_ptr.vmem [resolvable:$true] %s21_s10  ;;  %s41_s12 = int_to_ptr.vmem [resolvable:$true] %s40_s12 }
  0x1a   :  { %s875_s1 = scalar_lea.vmem %s22_s10, 64  ;;  %p880_p11 = scmp.lt.s32.totalorder %s22_s10, %s22_s10 }
  0x1b   :  { %p876_p10 = scmp.ne.s32.totalorder %s22_s10, %s875_s1  ;;  %p881_p12 = scmp.lt.s32.totalorder %s875_s1, %s875_s1 }
  0x1d   :  { %p882_p13 = por %p881_p12, %p880_p11 }
  0x1f   :  { %p883_p0 = pnand %p882_p13, %p876_p10 }
  0x21   :  { %886 = shalt.err (!%p883_p0)
}
  0x22   :  { %24 = dma.hbm_to_vmem [thread:$0]  %s1036_s0, 64, %s22_s10, [#allocation3]  }
  0x23   :  { %s895_s15 = scalar_lea.vmem %s41_s12, 3072  ;;  %p900_p2 = scmp.lt.s32.totalorder %s41_s12, %s41_s12 }
  0x24   :  { %p896_p1 = scmp.ne.s32.totalorder %s41_s12, %s895_s15  ;;  %p901_p3 = scmp.lt.s32.totalorder %s895_s15, %s895_s15 }
  0x26   :  { %p902_p4 = por %p901_p3, %p900_p2 }
  0x28   :  { %p903_p5 = pnand %p902_p4, %p896_p1 }
  0x2a   :  { %906 = shalt.err (!%p903_p5)
}
  0x2b   :  { %s961_s3 = smov 192   ;;  %s962_s16 = smov 12  }
  0x2c   :  { %46 = dma.hbm_to_vmem [thread:$0]  %s1038_s2, 3072, %s41_s12, [#allocation6], %s961_s3, %s961_s3, %s962_s16  }
  0x2d   :  { %s963_s19 = smov [#allocation10]  }
  0x2e   :  { %s64_s20 = sshll.u32 %s963_s19, 4  ;;  %s65_s20 = int_to_ptr.vmem [resolvable:$true] %s64_s20 }
  0x2f   :  { %s915_s21 = scalar_lea.vmem %s65_s20, 1024  ;;  %p920_p7 = scmp.lt.s32.totalorder %s65_s20, %s65_s20 }
  0x30   :  { %p916_p6 = scmp.ne.s32.totalorder %s65_s20, %s915_s21  ;;  %p921_p8 = scmp.lt.s32.totalorder %s915_s21, %s915_s21 }
  0x32   :  { %p922_p9 = por %p921_p8, %p920_p7 }
  0x34   :  { %p923_p10 = pnand %p922_p9, %p916_p6 }
  0x36   :  { %926 = shalt.err (!%p923_p10)
}
  0x37   :  { %s964_s0 = smov 64   ;;  %s965_s22 = smov 4  }
  0x38   :  { %70 = dma.hbm_to_vmem [thread:$0]  %s1040_s4, 1024, %s65_s20, [#allocation9], %s964_s0, %s964_s0, %s965_s22  }
  0x39   :  { %947 = dma.done.wait [#allocation3], 64  }
  0x3a   :  { %948 = vsyncadd [#allocation3], 4294967232 }
  0x3b   :  { %949 = dma.done.wait [#allocation6], 3200  }
  0x3c   :  { %950 = vsyncadd [#allocation6], 4294964096 }
  0x3d   :  { %951 = dma.done.wait [#allocation9], 3072  }
  0x3e   :  { %952 = vsyncadd [#allocation9], 4294964224  ;;  %v966_v0 = vmov 0   ;;  %v753_v1 = vld [vmem:[#allocation7 + $0xac] ss:$12 sps:$4 sm:$0xff]   ;;  %v967_v37 = vmov 0.0   ;;  %v125_v57 = vlaneseq }
  0x3f   :  { %300 = vmatprep.mubr.bf16.mxu0 %v966_v0  ;;  %v755_v2 = vld [vmem:[#allocation7 + $0xa8] ss:$12 sps:$4 sm:$0xff]   ;;  %268 = vmatprep.subr.bf16.mxu0 %v753_v1  ;;  %v758_v4 = vld [vmem:[#allocation7 + $0x90] ss:$12 sps:$4 sm:$0xff]   ;;  %v761_v6 = vld [vmem:[#allocation7 + $0x78] ss:$12 sps:$4 sm:$0xff]  }
  0x40   :  { %v756_v3 = vld [vmem:[#allocation7 + $0x94] ss:$12 sps:$4 sm:$0xff]   ;;  %269 = vmatpush1.bf16.msra.mxu0 %v755_v2  ;;  %v759_v5 = vld [vmem:[#allocation7 + $0x7c] ss:$12 sps:$4 sm:$0xff]   ;;  %v762_v7 = vld [vmem:[#allocation7 + $0x64] ss:$12 sps:$4 sm:$0xff]   ;;  %698 = vmatprep.subr.bf16.mxu1 %v967_v37 }
  0x41   :  { %270 = vmatprep.subr.bf16.mxu0 %v756_v3  ;;  %v764_v8 = vld [vmem:[#allocation7 + $0x60] ss:$12 sps:$4 sm:$0xff]   ;;  %v767_v10 = vld [vmem:[#allocation7 + $0x48] ss:$12 sps:$4 sm:$0xff]   ;;  %v770_v12 = vld [vmem:[#allocation7 + $0x30] ss:$12 sps:$4 sm:$0xff]  }
  0x42   :  { %v765_v9 = vld [vmem:[#allocation7 + $0x4c] ss:$12 sps:$4 sm:$0xff]   ;;  %v768_v11 = vld [vmem:[#allocation7 + $0x34] ss:$12 sps:$4 sm:$0xff]   ;;  %v771_v13 = vld [vmem:[#allocation7 + $0x1c] ss:$12 sps:$4 sm:$0xff]  }
  0x43   :  { %v773_v14 = vld [vmem:[#allocation7 + $0x18] ss:$12 sps:$4 sm:$0xff]   ;;  %v776_v16 = vld [vmem:[#allocation7] ss:$12 sps:$4 sm:$0xff]   ;;  %v779_v17 = vld [vmem:[#allocation8 + $0x74] ss:$8 sps:$4 sm:$0xff]  }
  0x44   :  { %271 = vmatpush1.bf16.msra.mxu0 %v758_v4  ;;  %v774_v15 = vld [vmem:[#allocation7 + $0x4] ss:$12 sps:$4 sm:$0xff]   ;;  %v1020_v18 = vld [vmem:[#allocation2] sm:$0xf]  ;;  %v780_v21 = vld [vmem:[#allocation8 + $0x60] ss:$8 sps:$4 sm:$0xff]  }
  0x45   :  { %272 = vmatprep.subr.bf16.mxu0 %v759_v5  ;;  %v777_v19 = vld [vmem:[#allocation8 + $0x70] ss:$8 sps:$4 sm:$0xff]   ;;  %v782_v20 = vld [vmem:[#allocation8 + $0x64] ss:$8 sps:$4 sm:$0xff]   ;;  %v785_v22 = vld [vmem:[#allocation8 + $0x54] ss:$8 sps:$4 sm:$0xff]  }
  0x46   :  { %v783_v23 = vld [vmem:[#allocation8 + $0x50] ss:$8 sps:$4 sm:$0xff]   ;;  %v788_v24 = vld [vmem:[#allocation8 + $0x44] ss:$8 sps:$4 sm:$0xff]   ;;  %v786_v25 = vld [vmem:[#allocation8 + $0x40] ss:$8 sps:$4 sm:$0xff]  }
  0x47   :  { %v791_v26 = vld [vmem:[#allocation8 + $0x34] ss:$8 sps:$4 sm:$0xff]   ;;  %v789_v27 = vld [vmem:[#allocation8 + $0x30] ss:$8 sps:$4 sm:$0xff]   ;;  %v794_v28 = vld [vmem:[#allocation8 + $0x24] ss:$8 sps:$4 sm:$0xff]  }
  0x48   :  { %273 = vmatpush1.bf16.msra.mxu0 %v761_v6  ;;  %v792_v29 = vld [vmem:[#allocation8 + $0x20] ss:$8 sps:$4 sm:$0xff]   ;;  %v797_v30 = vld [vmem:[#allocation8 + $0x14] ss:$8 sps:$4 sm:$0xff]   ;;  %v795_v31 = vld [vmem:[#allocation8 + $0x10] ss:$8 sps:$4 sm:$0xff]  }
  0x49   :  { %274 = vmatprep.subr.bf16.mxu0 %v762_v7  ;;  %v800_v32 = vld [vmem:[#allocation8 + $0x4] ss:$8 sps:$4 sm:$0xff]   ;;  %v798_v33 = vld [vmem:[#allocation8] ss:$8 sps:$4 sm:$0xff]   ;;  %v1023_v34 = vld [vmem:[#allocation5] sm:$0xff]  ;;  %vm968_vm0 = vmmov 0  }
  0x4a   :  { %v349_v35 = vpack.c.bf16 %v1023_v34, %v1023_v34  ;;  %v801_v36 = vld [vmem:[#allocation7 + $0xb0] ss:$12 sps:$4 sm:$0xff]   ;;  %v802_v38 = vld [vmem:[#allocation7 + $0x98] ss:$12 sps:$4 sm:$0xff]   ;;  %v803_v39 = vld [vmem:[#allocation7 + $0x80] ss:$12 sps:$4 sm:$0xff]   ;;  %714 = vmatprep.mubr.msk.bf16.mxu1 %vm968_vm0, %v967_v37 }
  0x4b   :  { %699 = vmatpush3.bf16.msra.mxu1 %v801_v36  ;;  %v804_v40 = vld [vmem:[#allocation7 + $0x68] ss:$12 sps:$4 sm:$0xff]   ;;  %v805_v41 = vld [vmem:[#allocation7 + $0x50] ss:$12 sps:$4 sm:$0xff]   ;;  %v806_v42 = vld [vmem:[#allocation7 + $0x38] ss:$12 sps:$4 sm:$0xff]  }
  0x4c   :  { %275 = vmatpush1.bf16.msra.mxu0 %v764_v8  ;;  %700 = vmatprep.subr.bf16.mxu1 %v967_v37  ;;  %v807_v43 = vld [vmem:[#allocation7 + $0x20] ss:$12 sps:$4 sm:$0xff]   ;;  %v808_v44 = vld [vmem:[#allocation7 + $0x8] ss:$12 sps:$4 sm:$0xff]   ;;  %v809_v45 = vld [vmem:[#allocation10 + $0x38] sm:$0xff]   ;;  %v126_v58 = vshrl.u32 %v125_v57, 7 }
  0x4d   :  { %276 = vmatprep.subr.bf16.mxu0 %v765_v9  ;;  %v810_v46 = vld [vmem:[#allocation10 + $0x30] sm:$0xff]   ;;  %v811_v47 = vld [vmem:[#allocation10 + $0x28] sm:$0xff]   ;;  %v812_v48 = vld [vmem:[#allocation10 + $0x20] sm:$0xff]  }
  0x4e   :  { %v813_v49 = vld [vmem:[#allocation10 + $0x18] sm:$0xff]   ;;  %v814_v50 = vld [vmem:[#allocation10 + $0x10] sm:$0xff]   ;;  %v815_v51 = vld [vmem:[#allocation10 + $0x8] sm:$0xff]   ;;  %v127_v59 = vsub.s32 0, %v126_v58  ;;  %v131_v61 = vsub.s32 1, %v126_v58 }
  0x4f   :  { %701 = vmatpush3.bf16.msra.mxu1 %v802_v38  ;;  %v816_v52 = vld [vmem:[#allocation10] sm:$0xff]   ;;  %v123_v60 = vld [vmem:[%s1041_s5] sm:$0x7]  ;;  %s969_s5 = smov [#allocation11]  }
  0x50   :  { %277 = vmatpush1.bf16.msra.mxu0 %v767_v10  ;;  %702 = vmatprep.subr.bf16.mxu1 %v967_v37  ;;  %v128_v62 = vrot.slane %v123_v60, %v127_v59  ;;  %v132_v63 = vrot.slane %v123_v60, %v131_v61  ;;  %s619_s25 = sshll.u32 %s969_s5, 4  ;;  %s620_s25 = int_to_ptr.vmem [resolvable:$true] %s619_s25 }
  0x51   :  { %278 = vmatprep.subr.bf16.mxu0 %v768_v11  ;;  %s927_s26 = scalar_lea.vmem %s620_s25, 128  ;;  %p932_p12 = scmp.lt.s32.totalorder %s620_s25, %s620_s25 }
  0x52   :  { %p928_p11 = scmp.ne.s32.totalorder %s620_s25, %s927_s26  ;;  %p933_p13 = scmp.lt.s32.totalorder %s927_s26, %s927_s26 }
  0x53   :  { %703 = vmatpush3.bf16.msra.mxu1 %v803_v39 }
  0x54   :  { %279 = vmatpush1.bf16.msra.mxu0 %v770_v12  ;;  %704 = vmatprep.subr.bf16.mxu1 %v967_v37  ;;  %p934_p0 = por %p933_p13, %p932_p12 }
  0x55   :  { %280 = vmatprep.subr.bf16.mxu0 %v771_v13 }
  0x56   :  { %p935_p1 = pnand %p934_p0, %p928_p11 }
  0x57   :  { %705 = vmatpush3.bf16.msra.mxu1 %v804_v40 }
  0x58   :  { %281 = vmatpush1.bf16.msra.mxu0 %v773_v14  ;;  %706 = vmatprep.subr.bf16.mxu1 %v967_v37 }
  0x59   :  { %282 = vmatprep.subr.bf16.mxu0 %v774_v15 }
  0x5b   :  { %707 = vmatpush3.bf16.msra.mxu1 %v805_v41 }
  0x5c   :  { %283 = vmatpush1.bf16.msra.mxu0 %v776_v16  ;;  %708 = vmatprep.subr.bf16.mxu1 %v967_v37 }
  0x5d   :  { %446 = vmatprep.subr.bf16.mxu0 %v779_v17 }
  0x5f   :  { %301 = vmatmul.mubr.bf16.vlgmr.msra.gmra.mxu0 %v1020_v18  ;;  %709 = vmatpush3.bf16.msra.mxu1 %v806_v42 }
  0x60   :  { %447 = vmatpush1.bf16.msra.mxu0 %v777_v19  ;;  %478 = vmatprep.mubr.bf16.mxu0 %v966_v0  ;;  %v135_v19 = vsub.s32 2, %v126_v58 }
  0x61   :  { %448 = vmatprep.subr.bf16.mxu0 %v782_v20  ;;  %710 = vmatprep.subr.bf16.mxu1 %v967_v37 }
  0x62   :  { %v136_v20 = vrot.slane %v123_v60, %v135_v19 }
  0x63   :  { %711 = vmatpush3.bf16.msra.mxu1 %v807_v43 }
  0x64   :  { %449 = vmatpush1.bf16.msra.mxu0 %v780_v21  ;;  %712 = vmatprep.subr.bf16.mxu1 %v967_v37 }
  0x65   :  { %450 = vmatprep.subr.bf16.mxu0 %v785_v22 }
  0x67   :  { %713 = vmatpush3.bf16.msra.mxu1 %v808_v44 }
  0x68   :  { %451 = vmatpush1.bf16.msra.mxu0 %v783_v23  ;;  %718 = vmatprep.subr.bf16.mxu1 %v967_v37 }
  0x69   :  { %452 = vmatprep.subr.bf16.mxu0 %v788_v24 }
  0x6a   :  { %715 = vmatmul.mubr.bf16.vlgmr.msra.gmra.mxu1 %v1020_v18 }
  0x6b   :  { %734 = vmatprep.mubr.msk.bf16.mxu1 %vm968_vm0, %v967_v37  ;;  %719 = vmatpush3.bf16.msra.mxu1 %v809_v45 }
  0x6c   :  { %453 = vmatpush1.bf16.msra.mxu0 %v786_v25  ;;  %720 = vmatprep.subr.bf16.mxu1 %v967_v37 }
  0x6d   :  { %454 = vmatprep.subr.bf16.mxu0 %v791_v26 }
  0x6f   :  { %721 = vmatpush3.bf16.msra.mxu1 %v810_v46 }
  0x70   :  { %455 = vmatpush1.bf16.msra.mxu0 %v789_v27  ;;  %722 = vmatprep.subr.bf16.mxu1 %v967_v37 }
  0x71   :  { %456 = vmatprep.subr.bf16.mxu0 %v794_v28 }
  0x73   :  { %723 = vmatpush3.bf16.msra.mxu1 %v811_v47 }
  0x74   :  { %457 = vmatpush1.bf16.msra.mxu0 %v792_v29  ;;  %724 = vmatprep.subr.bf16.mxu1 %v967_v37 }
  0x75   :  { %458 = vmatprep.subr.bf16.mxu0 %v797_v30 }
  0x77   :  { %725 = vmatpush3.bf16.msra.mxu1 %v812_v48 }
  0x78   :  { %459 = vmatpush1.bf16.msra.mxu0 %v795_v31  ;;  %726 = vmatprep.subr.bf16.mxu1 %v967_v37 }
  0x79   :  { %460 = vmatprep.subr.bf16.mxu0 %v800_v32 }
  0x7b   :  { %727 = vmatpush3.bf16.msra.mxu1 %v813_v49 }
  0x7c   :  { %461 = vmatpush1.bf16.msra.mxu0 %v798_v33  ;;  %728 = vmatprep.subr.bf16.mxu1 %v967_v37 }
  0x7f   :  { %479 = vmatmul.mubr.bf16.vlgmr.msra.gmra.mxu0 %v349_v35  ;;  %729 = vmatpush3.bf16.msra.mxu1 %v814_v50 }
  0x80   :  { %730 = vmatprep.subr.bf16.mxu1 %v967_v37 }
  0x83   :  { %731 = vmatpush3.bf16.msra.mxu1 %v815_v51 }
  0x84   :  { %732 = vmatprep.subr.bf16.mxu1 %v967_v37 }
  0x87   :  { %733 = vmatpush3.bf16.msra.mxu1 %v816_v52 }
 0x11f   :  { %v302_v53 = vpop.f32.mrf.mxu0 }
 0x120   :  { %v303_v0 = vadd.f32 %v302_v53, %v128_v62 }
 0x121   :  { %v304_v54 = vpop.f32.mrf.mxu0 }
 0x122   :  { %v305_v2 = vadd.f32 %v304_v54, %v132_v63 }
 0x123   :  { %v306_v55 = vpop.f32.mrf.mxu0 }
 0x125   :  { %v307_v56 = vpop.f32.mrf.mxu0 }
 0x12a   :  { %v343_v14 = vpop.f32.mrf.mxu1 }
 0x12b   :  { %v344_v22 = vadd.f32 %v343_v14, %v136_v20 }
 0x12c   :  { %v716_v15 = vpop.f32.mrf.mxu1 }
 0x12e   :  { %v346_v16 = vpop.f32.mrf.mxu1 }
 0x130   :  { %v717_v17 = vpop.f32.mrf.mxu1 }
 0x13f   :  { %v480_v1 = vpop.f32.mrf.mxu0 }
 0x140   :  { %v487_v3 = vadd.f32 %v480_v1, %v303_v0 }
 0x141   :  { %v482_v4 = vpop.f32.mrf.mxu0 }
 0x142   :  { %v670_v5 = vmul.f32 -1.442695, %v487_v3  ;;  %v494_v6 = vadd.f32 %v482_v4, %v305_v2 }
 0x143   :  { %v484_v7 = vpop.f32.mrf.mxu0 }
 0x144   :  { %817 = vpow2.f32 %v670_v5  ;;  %v671_v18 = vmul.f32 -1.442695, %v494_v6 }
 0x145   :  { %v485_v8 = vpop.f32.mrf.mxu0 }
 0x151   :  { %v818_v9 = vpop.eup %817 }
 0x152   :  { %v491_v10 = vadd.f32 1.0, %v818_v9 }
 0x154   :  { %819 = vrcp.f32 %v491_v10 }
 0x155   :  { %821 = vpow2.f32 %v671_v18 }
 0x161   :  { %v820_v11 = vpop.eup %819 }
 0x162   :  { %v501_v12 = vmul.f32 %v820_v11, %v1023_v34  ;;  %v822_v21 = vpop.eup %821 }
 0x163   :  { %v498_v24 = vadd.f32 1.0, %v822_v21 }
 0x164   :  { %v502_v13 = vpack.c.bf16 %v501_v12, %v501_v12 }
 0x166   :  { %735 = vmatmul.mubr.bf16.vlgmr.msra.gmra.mxu1 %v502_v13 }
 0x226   :  { %v601_v23 = vpop.f32.mrf.mxu1 }
 0x227   :  { %v607_v25 = vadd.f32 %v601_v23, %v344_v22 }
 0x228   :  { %v736_v26 = vpop.f32.mrf.mxu1 }
 0x229   :  { %823 = vtanh.f32 %v607_v25 }
 0x22a   :  { %v604_v27 = vpop.f32.mrf.mxu1  ;;  %825 = vrcp.f32 %v498_v24 }
 0x22c   :  { %v737_v28 = vpop.f32.mrf.mxu1 }
 0x236   :  { %v824_v29 = vpop.eup %823 }
 0x237   :  { %v609_v30 = vsub.f32 %v1023_v34, %v824_v29  ;;  %v826_v31 = vpop.eup %825 }
 0x239   :  { %v610_v32 = vmul.f32 %v826_v31, %v609_v30 }
 0x23b   :  { %v611_v33 = vadd.f32 %v824_v29, %v610_v32 }
 0x23d   :  { %612 = vst [vmem:[#allocation11] sm:$0xff] %v611_v33 }
 0x23e   :  { %938 = shalt.err (!%p935_p1)
}
 0x23f   :  { %622 = dma.vmem_to_hbm [thread:$0]  %s620_s25, 128, %s1042_s6, [#allocation4]  }
 0x240   :  { %953 = dma.done.wait [#allocation4], 128  }
 0x241   :  { %954 = vsyncadd [#allocation4], 4294967168 }
 0x242   :  { %626 = vsyncpa [#allocation3], 1 }
 0x243   :  { %627 = vsyncpa [#allocation6], 1 }
 0x244   :  { %628 = vsyncpa [#allocation9], 1 }
 0x245   :  { %629 = vsyncpa [#allocation4], 1 }

// kernel: tpu_custom_call.1
= control target key start
LH: loop header
LB: loop body
LE: loop exit
PB: predicated region body
PF: predicated region fallthrough
CT: control target
= control target key end

     0   :  { %11 = vsyncpa [#allocation3], 0  ;;  %s1036_s0 = inlined_call_operand.hbm [shape: bf16[8,128], index: 0, kind: input, shape index: {}]   ;;  %s1037_s1 = inlined_call_operand.hbm [shape: f32[8,128], index: 1, kind: input, shape index: {}]   ;;  %s1038_s2 = inlined_call_operand.hbm [shape: bf16[128,384], index: 2, kind: input, shape index: {}]   ;;  %s1039_s3 = inlined_call_operand.hbm [shape: bf16[128,256], index: 3, kind: input, shape index: {}]   ;;  %s1040_s4 = inlined_call_operand.hbm [shape: bf16[128,128], index: 4, kind: input, shape index: {}]   ;;  %s1041_s5 = inlined_call_operand.vmem [shape: f32[1,384], index: 5, kind: input, shape index: {}]   ;;  %s1042_s6 = inlined_call_operand.hbm [shape: f32[8,128], index: 6, kind: output, shape index: {}]  }
   0x1   :  { %12 = vsyncpa [#allocation6], 0 }
   0x2   :  { %13 = vsyncpa [#allocation9], 0 }
   0x3   :  { %14 = vsyncpa [#allocation4], 0  ;;  %s955_s21 = smov [#allocation5]   ;;  %s956_s23 = smov [#allocation8]  }
   0x4   :  { %s31_s22 = sshll.u32 %s955_s21, 4  ;;  %s52_s24 = sshll.u32 %s956_s23, 4  ;;  %s32_s22 = int_to_ptr.vmem [resolvable:$true] %s31_s22  ;;  %s53_s24 = int_to_ptr.vmem [resolvable:$true] %s52_s24 }
   0x5   :  { %s835_s25 = scalar_lea.vmem %s32_s22, 128  ;;  %p840_p1 = scmp.lt.s32.totalorder %s32_s22, %s32_s22 }
   0x6   :  { %p836_p0 = scmp.ne.s32.totalorder %s32_s22, %s835_s25  ;;  %p841_p2 = scmp.lt.s32.totalorder %s835_s25, %s835_s25 }
   0x8   :  { %p842_p3 = por %p841_p2, %p840_p1 }
   0xa   :  { %p843_p4 = pnand %p842_p3, %p836_p0 }
   0xc   :  { %846 = shalt.err (!%p843_p4)
}
   0xd   :  { %34 = dma.hbm_to_vmem [thread:$0]  %s1037_s1, 128, %s32_s22, [#allocation6]  }
   0xe   :  { %s855_s28 = scalar_lea.vmem %s53_s24, 2048  ;;  %p860_p6 = scmp.lt.s32.totalorder %s53_s24, %s53_s24 }
   0xf   :  { %p856_p5 = scmp.ne.s32.totalorder %s53_s24, %s855_s28  ;;  %p861_p7 = scmp.lt.s32.totalorder %s855_s28, %s855_s28 }
  0x11   :  { %p862_p8 = por %p861_p7, %p860_p6 }
  0x13   :  { %p863_p9 = pnand %p862_p8, %p856_p5 }
  0x15   :  { %866 = shalt.err (!%p863_p9)
}
  0x16   :  { %s957_s29 = smov 128   ;;  %s958_s30 = smov 8  }
  0x17   :  { %58 = dma.hbm_to_vmem [thread:$0]  %s1039_s3, 2048, %s53_s24, [#allocation9], %s957_s29, %s957_s29, %s958_s30  }
  0x18   :  { %s959_s9 = smov [#allocation2]   ;;  %s960_s11 = smov [#allocation7]  }
  0x19   :  { %s21_s10 = sshll.u32 %s959_s9, 4  ;;  %s40_s12 = sshll.u32 %s960_s11, 4  ;;  %s22_s10 = int_to_ptr.vmem [resolvable:$true] %s21_s10  ;;  %s41_s12 = int_to_ptr.vmem [resolvable:$true] %s40_s12 }
  0x1a   :  { %s875_s1 = scalar_lea.vmem %s22_s10, 64  ;;  %p880_p11 = scmp.lt.s32.totalorder %s22_s10, %s22_s10 }
  0x1b   :  { %p876_p10 = scmp.ne.s32.totalorder %s22_s10, %s875_s1  ;;  %p881_p12 = scmp.lt.s32.totalorder %s875_s1, %s875_s1 }
  0x1d   :  { %p882_p13 = por %p881_p12, %p880_p11 }
  0x1f   :  { %p883_p0 = pnand %p882_p13, %p876_p10 }
  0x21   :  { %886 = shalt.err (!%p883_p0)
}
  0x22   :  { %24 = dma.hbm_to_vmem [thread:$0]  %s1036_s0, 64, %s22_s10, [#allocation3]  }
  0x23   :  { %s895_s15 = scalar_lea.vmem %s41_s12, 3072  ;;  %p900_p2 = scmp.lt.s32.totalorder %s41_s12, %s41_s12 }
  0x24   :  { %p896_p1 = scmp.ne.s32.totalorder %s41_s12, %s895_s15  ;;  %p901_p3 = scmp.lt.s32.totalorder %s895_s15, %s895_s15 }
  0x26   :  { %p902_p4 = por %p901_p3, %p900_p2 }
  0x28   :  { %p903_p5 = pnand %p902_p4, %p896_p1 }
  0x2a   :  { %906 = shalt.err (!%p903_p5)
}
  0x2b   :  { %s961_s3 = smov 192   ;;  %s962_s16 = smov 12  }
  0x2c   :  { %46 = dma.hbm_to_vmem [thread:$0]  %s1038_s2, 3072, %s41_s12, [#allocation6], %s961_s3, %s961_s3, %s962_s16  }
  0x2d   :  { %s963_s19 = smov [#allocation10]  }
  0x2e   :  { %s64_s20 = sshll.u32 %s963_s19, 4  ;;  %s65_s20 = int_to_ptr.vmem [resolvable:$true] %s64_s20 }
  0x2f   :  { %s915_s21 = scalar_lea.vmem %s65_s20, 1024  ;;  %p920_p7 = scmp.lt.s32.totalorder %s65_s20, %s65_s20 }
  0x30   :  { %p916_p6 = scmp.ne.s32.totalorder %s65_s20, %s915_s21  ;;  %p921_p8 = scmp.lt.s32.totalorder %s915_s21, %s915_s21 }
  0x32   :  { %p922_p9 = por %p921_p8, %p920_p7 }
  0x34   :  { %p923_p10 = pnand %p922_p9, %p916_p6 }
  0x36   :  { %926 = shalt.err (!%p923_p10)
}
  0x37   :  { %s964_s0 = smov 64   ;;  %s965_s22 = smov 4  }
  0x38   :  { %70 = dma.hbm_to_vmem [thread:$0]  %s1040_s4, 1024, %s65_s20, [#allocation9], %s964_s0, %s964_s0, %s965_s22  }
  0x39   :  { %947 = dma.done.wait [#allocation3], 64  }
  0x3a   :  { %948 = vsyncadd [#allocation3], 4294967232 }
  0x3b   :  { %949 = dma.done.wait [#allocation6], 3200  }
  0x3c   :  { %950 = vsyncadd [#allocation6], 4294964096 }
  0x3d   :  { %951 = dma.done.wait [#allocation9], 3072  }
  0x3e   :  { %952 = vsyncadd [#allocation9], 4294964224  ;;  %v966_v0 = vmov 0   ;;  %v753_v1 = vld [vmem:[#allocation7 + $0xac] ss:$12 sps:$4 sm:$0xff]   ;;  %v967_v37 = vmov 0.0   ;;  %v125_v57 = vlaneseq }
  0x3f   :  { %300 = vmatprep.mubr.bf16.mxu0 %v966_v0  ;;  %v755_v2 = vld [vmem:[#allocation7 + $0xa8] ss:$12 sps:$4 sm:$0xff]   ;;  %268 = vmatprep.subr.bf16.mxu0 %v753_v1  ;;  %v758_v4 = vld [vmem:[#allocation7 + $0x90] ss:$12 sps:$4 sm:$0xff]   ;;  %v761_v6 = vld [vmem:[#allocation7 + $0x78] ss:$12 sps:$4 sm:$0xff]  }
  0x40   :  { %v756_v3 = vld [vmem:[#allocation7 + $0x94] ss:$12 sps:$4 sm:$0xff]   ;;  %269 = vmatpush1.bf16.msra.mxu0 %v755_v2  ;;  %v759_v5 = vld [vmem:[#allocation7 + $0x7c] ss:$12 sps:$4 sm:$0xff]   ;;  %v762_v7 = vld [vmem:[#allocation7 + $0x64] ss:$12 sps:$4 sm:$0xff]   ;;  %698 = vmatprep.subr.bf16.mxu1 %v967_v37 }
  0x41   :  { %270 = vmatprep.subr.bf16.mxu0 %v756_v3  ;;  %v764_v8 = vld [vmem:[#allocation7 + $0x60] ss:$12 sps:$4 sm:$0xff]   ;;  %v767_v10 = vld [vmem:[#allocation7 + $0x48] ss:$12 sps:$4 sm:$0xff]   ;;  %v770_v12 = vld [vmem:[#allocation7 + $0x30] ss:$12 sps:$4 sm:$0xff]  }
  0x42   :  { %v765_v9 = vld [vmem:[#allocation7 + $0x4c] ss:$12 sps:$4 sm:$0xff]   ;;  %v768_v11 = vld [vmem:[#allocation7 + $0x34] ss:$12 sps:$4 sm:$0xff]   ;;  %v771_v13 = vld [vmem:[#allocation7 + $0x1c] ss:$12 sps:$4 sm:$0xff]  }
  0x43   :  { %v773_v14 = vld [vmem:[#allocation7 + $0x18] ss:$12 sps:$4 sm:$0xff]   ;;  %v776_v16 = vld [vmem:[#allocation7] ss:$12 sps:$4 sm:$0xff]   ;;  %v779_v17 = vld [vmem:[#allocation8 + $0x74] ss:$8 sps:$4 sm:$0xff]  }
  0x44   :  { %271 = vmatpush1.bf16.msra.mxu0 %v758_v4  ;;  %v774_v15 = vld [vmem:[#allocation7 + $0x4] ss:$12 sps:$4 sm:$0xff]   ;;  %v1020_v18 = vld [vmem:[#allocation2] sm:$0xf]  ;;  %v780_v21 = vld [vmem:[#allocation8 + $0x60] ss:$8 sps:$4 sm:$0xff]  }
  0x45   :  { %272 = vmatprep.subr.bf16.mxu0 %v759_v5  ;;  %v777_v19 = vld [vmem:[#allocation8 + $0x70] ss:$8 sps:$4 sm:$0xff]   ;;  %v782_v20 = vld [vmem:[#allocation8 + $0x64] ss:$8 sps:$4 sm:$0xff]   ;;  %v785_v22 = vld [vmem:[#allocation8 + $0x54] ss:$8 sps:$4 sm:$0xff]  }
  0x46   :  { %v783_v23 = vld [vmem:[#allocation8 + $0x50] ss:$8 sps:$4 sm:$0xff]   ;;  %v788_v24 = vld [vmem:[#allocation8 + $0x44] ss:$8 sps:$4 sm:$0xff]   ;;  %v786_v25 = vld [vmem:[#allocation8 + $0x40] ss:$8 sps:$4 sm:$0xff]  }
  0x47   :  { %v791_v26 = vld [vmem:[#allocation8 + $0x34] ss:$8 sps:$4 sm:$0xff]   ;;  %v789_v27 = vld [vmem:[#allocation8 + $0x30] ss:$8 sps:$4 sm:$0xff]   ;;  %v794_v28 = vld [vmem:[#allocation8 + $0x24] ss:$8 sps:$4 sm:$0xff]  }
  0x48   :  { %273 = vmatpush1.bf16.msra.mxu0 %v761_v6  ;;  %v792_v29 = vld [vmem:[#allocation8 + $0x20] ss:$8 sps:$4 sm:$0xff]   ;;  %v797_v30 = vld [vmem:[#allocation8 + $0x14] ss:$8 sps:$4 sm:$0xff]   ;;  %v795_v31 = vld [vmem:[#allocation8 + $0x10] ss:$8 sps:$4 sm:$0xff]  }
  0x49   :  { %274 = vmatprep.subr.bf16.mxu0 %v762_v7  ;;  %v800_v32 = vld [vmem:[#allocation8 + $0x4] ss:$8 sps:$4 sm:$0xff]   ;;  %v798_v33 = vld [vmem:[#allocation8] ss:$8 sps:$4 sm:$0xff]   ;;  %v1023_v34 = vld [vmem:[#allocation5] sm:$0xff]  ;;  %vm968_vm0 = vmmov 0  }
  0x4a   :  { %v349_v35 = vpack.c.bf16 %v1023_v34, %v1023_v34  ;;  %v801_v36 = vld [vmem:[#allocation7 + $0xb0] ss:$12 sps:$4 sm:$0xff]   ;;  %v802_v38 = vld [vmem:[#allocation7 + $0x98] ss:$12 sps:$4 sm:$0xff]   ;;  %v803_v39 = vld [vmem:[#allocation7 + $0x80] ss:$12 sps:$4 sm:$0xff]   ;;  %714 = vmatprep.mubr.msk.bf16.mxu1 %vm968_vm0, %v967_v37 }
  0x4b   :  { %699 = vmatpush3.bf16.msra.mxu1 %v801_v36  ;;  %v804_v40 = vld [vmem:[#allocation7 + $0x68] ss:$12 sps:$4 sm:$0xff]   ;;  %v805_v41 = vld [vmem:[#allocation7 + $0x50] ss:$12 sps:$4 sm:$0xff]   ;;  %v806_v42 = vld [vmem:[#allocation7 + $0x38] ss:$12 sps:$4 sm:$0xff]  }
  0x4c   :  { %275 = vmatpush1.bf16.msra.mxu0 %v764_v8  ;;  %700 = vmatprep.subr.bf16.mxu1 %v967_v37  ;;  %v807_v43 = vld [vmem:[#allocation7 + $0x20] ss:$12 sps:$4 sm:$0xff]   ;;  %v808_v44 = vld [vmem:[#allocation7 + $0x8] ss:$12 sps:$4 sm:$0xff]   ;;  %v809_v45 = vld [vmem:[#allocation10 + $0x38] sm:$0xff]   ;;  %v126_v58 = vshrl.u32 %v125_v57, 7 }
  0x4d   :  { %276 = vmatprep.subr.bf16.mxu0 %v765_v9  ;;  %v810_v46 = vld [vmem:[#allocation10 + $0x30] sm:$0xff]   ;;  %v811_v47 = vld [vmem:[#allocation10 + $0x28] sm:$0xff]   ;;  %v812_v48 = vld [vmem:[#allocation10 + $0x20] sm:$0xff]  }
  0x4e   :  { %v813_v49 = vld [vmem:[#allocation10 + $0x18] sm:$0xff]   ;;  %v814_v50 = vld [vmem:[#allocation10 + $0x10] sm:$0xff]   ;;  %v815_v51 = vld [vmem:[#allocation10 + $0x8] sm:$0xff]   ;;  %v127_v59 = vsub.s32 0, %v126_v58  ;;  %v131_v61 = vsub.s32 1, %v126_v58 }
  0x4f   :  { %701 = vmatpush3.bf16.msra.mxu1 %v802_v38  ;;  %v816_v52 = vld [vmem:[#allocation10] sm:$0xff]   ;;  %v123_v60 = vld [vmem:[%s1041_s5] sm:$0x7]  ;;  %s969_s5 = smov [#allocation11]  }
  0x50   :  { %277 = vmatpush1.bf16.msra.mxu0 %v767_v10  ;;  %702 = vmatprep.subr.bf16.mxu1 %v967_v37  ;;  %v128_v62 = vrot.slane %v123_v60, %v127_v59  ;;  %v132_v63 = vrot.slane %v123_v60, %v131_v61  ;;  %s619_s25 = sshll.u32 %s969_s5, 4  ;;  %s620_s25 = int_to_ptr.vmem [resolvable:$true] %s619_s25 }
  0x51   :  { %278 = vmatprep.subr.bf16.mxu0 %v768_v11  ;;  %s927_s26 = scalar_lea.vmem %s620_s25, 128  ;;  %p932_p12 = scmp.lt.s32.totalorder %s620_s25, %s620_s25 }
  0x52   :  { %p928_p11 = scmp.ne.s32.totalorder %s620_s25, %s927_s26  ;;  %p933_p13 = scmp.lt.s32.totalorder %s927_s26, %s927_s26 }
  0x53   :  { %703 = vmatpush3.bf16.msra.mxu1 %v803_v39 }
  0x54   :  { %279 = vmatpush1.bf16.msra.mxu0 %v770_v12  ;;  %704 = vmatprep.subr.bf16.mxu1 %v967_v37  ;;  %p934_p0 = por %p933_p13, %p932_p12 }
  0x55   :  { %280 = vmatprep.subr.bf16.mxu0 %v771_v13 }
  0x56   :  { %p935_p1 = pnand %p934_p0, %p928_p11 }
  0x57   :  { %705 = vmatpush3.bf16.msra.mxu1 %v804_v40 }
  0x58   :  { %281 = vmatpush1.bf16.msra.mxu0 %v773_v14  ;;  %706 = vmatprep.subr.bf16.mxu1 %v967_v37 }
  0x59   :  { %282 = vmatprep.subr.bf16.mxu0 %v774_v15 }
  0x5b   :  { %707 = vmatpush3.bf16.msra.mxu1 %v805_v41 }
  0x5c   :  { %283 = vmatpush1.bf16.msra.mxu0 %v776_v16  ;;  %708 = vmatprep.subr.bf16.mxu1 %v967_v37 }
  0x5d   :  { %446 = vmatprep.subr.bf16.mxu0 %v779_v17 }
  0x5f   :  { %301 = vmatmul.mubr.bf16.vlgmr.msra.gmra.mxu0 %v1020_v18  ;;  %709 = vmatpush3.bf16.msra.mxu1 %v806_v42 }
  0x60   :  { %447 = vmatpush1.bf16.msra.mxu0 %v777_v19  ;;  %478 = vmatprep.mubr.bf16.mxu0 %v966_v0  ;;  %v135_v19 = vsub.s32 2, %v126_v58 }
  0x61   :  { %448 = vmatprep.subr.bf16.mxu0 %v782_v20  ;;  %710 = vmatprep.subr.bf16.mxu1 %v967_v37 }
  0x62   :  { %v136_v20 = vrot.slane %v123_v60, %v135_v19 }
  0x63   :  { %711 = vmatpush3.bf16.msra.mxu1 %v807_v43 }
  0x64   :  { %449 = vmatpush1.bf16.msra.mxu0 %v780_v21  ;;  %712 = vmatprep.subr.bf16.mxu1 %v967_v37 }
  0x65   :  { %450 = vmatprep.subr.bf16.mxu0 %v785_v22 }
  0x67   :  { %713 = vmatpush3.bf16.msra.mxu1 %v808_v44 }
  0x68   :  { %451 = vmatpush1.bf16.msra.mxu0 %v783_v23  ;;  %718 = vmatprep.subr.bf16.mxu1 %v967_v37 }
  0x69   :  { %452 = vmatprep.subr.bf16.mxu0 %v788_v24 }
  0x6a   :  { %715 = vmatmul.mubr.bf16.vlgmr.msra.gmra.mxu1 %v1020_v18 }
  0x6b   :  { %734 = vmatprep.mubr.msk.bf16.mxu1 %vm968_vm0, %v967_v37  ;;  %719 = vmatpush3.bf16.msra.mxu1 %v809_v45 }
  0x6c   :  { %453 = vmatpush1.bf16.msra.mxu0 %v786_v25  ;;  %720 = vmatprep.subr.bf16.mxu1 %v967_v37 }
  0x6d   :  { %454 = vmatprep.subr.bf16.mxu0 %v791_v26 }
  0x6f   :  { %721 = vmatpush3.bf16.msra.mxu1 %v810_v46 }
  0x70   :  { %455 = vmatpush1.bf16.msra.mxu0 %v789_v27  ;;  %722 = vmatprep.subr.bf16.mxu1 %v967_v37 }
  0x71   :  { %456 = vmatprep.subr.bf16.mxu0 %v794_v28 }
  0x73   :  { %723 = vmatpush3.bf16.msra.mxu1 %v811_v47 }
  0x74   :  { %457 = vmatpush1.bf16.msra.mxu0 %v792_v29  ;;  %724 = vmatprep.subr.bf16.mxu1 %v967_v37 }
  0x75   :  { %458 = vmatprep.subr.bf16.mxu0 %v797_v30 }
  0x77   :  { %725 = vmatpush3.bf16.msra.mxu1 %v812_v48 }
  0x78   :  { %459 = vmatpush1.bf16.msra.mxu0 %v795_v31  ;;  %726 = vmatprep.subr.bf16.mxu1 %v967_v37 }
  0x79   :  { %460 = vmatprep.subr.bf16.mxu0 %v800_v32 }
  0x7b   :  { %727 = vmatpush3.bf16.msra.mxu1 %v813_v49 }
  0x7c   :  { %461 = vmatpush1.bf16.msra.mxu0 %v798_v33  ;;  %728 = vmatprep.subr.bf16.mxu1 %v967_v37 }
  0x7f   :  { %479 = vmatmul.mubr.bf16.vlgmr.msra.gmra.mxu0 %v349_v35  ;;  %729 = vmatpush3.bf16.msra.mxu1 %v814_v50 }
  0x80   :  { %730 = vmatprep.subr.bf16.mxu1 %v967_v37 }
  0x83   :  { %731 = vmatpush3.bf16.msra.mxu1 %v815_v51 }
  0x84   :  { %732 = vmatprep.subr.bf16.mxu1 %v967_v37 }
  0x87   :  { %733 = vmatpush3.bf16.msra.mxu1 %v816_v52 }
 0x11f   :  { %v302_v53 = vpop.f32.mrf.mxu0 }
 0x120   :  { %v303_v0 = vadd.f32 %v302_v53, %v128_v62 }
 0x121   :  { %v304_v54 = vpop.f32.mrf.mxu0 }
 0x122   :  { %v305_v2 = vadd.f32 %v304_v54, %v132_v63 }
 0x123   :  { %v306_v55 = vpop.f32.mrf.mxu0 }
 0x125   :  { %v307_v56 = vpop.f32.mrf.mxu0 }
 0x12a   :  { %v343_v14 = vpop.f32.mrf.mxu1 }
 0x12b   :  { %v344_v22 = vadd.f32 %v343_v14, %v136_v20 }
 0x12c   :  { %v716_v15 = vpop.f32.mrf.mxu1 }
 0x12e   :  { %v346_v16 = vpop.f32.mrf.mxu1 }
 0x130   :  { %v717_v17 = vpop.f32.mrf.mxu1 }
 0x13f   :  { %v480_v1 = vpop.f32.mrf.mxu0 }
 0x140   :  { %v487_v3 = vadd.f32 %v480_v1, %v303_v0 }
 0x141   :  { %v482_v4 = vpop.f32.mrf.mxu0 }
 0x142   :  { %v670_v5 = vmul.f32 -1.442695, %v487_v3  ;;  %v494_v6 = vadd.f32 %v482_v4, %v305_v2 }
 0x143   :  { %v484_v7 = vpop.f32.mrf.mxu0 }
 0x144   :  { %817 = vpow2.f32 %v670_v5  ;;  %v671_v18 = vmul.f32 -1.442695, %v494_v6 }
 0x145   :  { %v485_v8 = vpop.f32.mrf.mxu0 }
 0x151   :  { %v818_v9 = vpop.eup %817 }
 0x152   :  { %v491_v10 = vadd.f32 1.0, %v818_v9 }
 0x154   :  { %819 = vrcp.f32 %v491_v10 }
 0x155   :  { %821 = vpow2.f32 %v671_v18 }
 0x161   :  { %v820_v11 = vpop.eup %819 }
 0x162   :  { %v501_v12 = vmul.f32 %v820_v11, %v1023_v34  ;;  %v822_v21 = vpop.eup %821 }
 0x163   :  { %v498_v24 = vadd.f32 1.0, %v822_v21 }
 0x164   :  { %v502_v13 = vpack.c.bf16 %v501_v12, %v501_v12 }
 0x166   :  { %735 = vmatmul.mubr.bf16.vlgmr.msra.gmra.mxu1 %v502_v13 }
 0x226   :  { %v601_v23 = vpop.f32.mrf.mxu1 }
 0x227   :  { %v607_v25 = vadd.f32 %v601_v23, %v344_v22 }
 0x228   :  { %v736_v26 = vpop.f32.mrf.mxu1 }
 0x229   :  { %823 = vtanh.f32 %v607_v25 }
 0x22a   :  { %v604_v27 = vpop.f32.mrf.mxu1  ;;  %825 = vrcp.f32 %v498_v24 }
 0x22c   :  { %v737_v28 = vpop.f32.mrf.mxu1 }
 0x236   :  { %v824_v29 = vpop.eup %823 }
 0x237   :  { %v609_v30 = vsub.f32 %v1023_v34, %v824_v29  ;;  %v826_v31 = vpop.eup %825 }
 0x239   :  { %v610_v32 = vmul.f32 %v826_v31, %v609_v30 }
 0x23b   :  { %v611_v33 = vadd.f32 %v824_v29, %v610_v32 }
 0x23d   :  { %612 = vst [vmem:[#allocation11] sm:$0xff] %v611_v33 }
 0x23e   :  { %938 = shalt.err (!%p935_p1)
}
 0x23f   :  { %622 = dma.vmem_to_hbm [thread:$0]  %s620_s25, 128, %s1042_s6, [#allocation4]  }
 0x240   :  { %953 = dma.done.wait [#allocation4], 128  }
 0x241   :  { %954 = vsyncadd [#allocation4], 4294967168 }
 0x242   :  { %626 = vsyncpa [#allocation3], 1 }
 0x243   :  { %627 = vsyncpa [#allocation6], 1 }
 0x244   :  { %628 = vsyncpa [#allocation9], 1 }
 0x245   :  { %629 = vsyncpa [#allocation4], 1 }

</bundles_post_ra>
